<compile_context>
chip_gen: v7x
topology: tpu7x:2x2x1
jax: 0.10.0
libtpu: 0.0.40
codegen_flags: <defaults>
</compile_context>

<pallas_src>
import functools

import jax
import jax.numpy as jnp
from jax.experimental import pallas as pl
from jax.experimental.pallas import tpu as pltpu

_MAX_TB = 8192  # hard cap on the batch tile (keeps temporaries well inside VMEM)


def _round_up(x, m):
    return ((x + m - 1) // m) * m


def _tile_vmem_bytes(rows, cols, itemsize):
    # (8,128)-tiled VMEM footprint; sub-32-bit dtypes pack along sublanes.
    packing = max(1, 4 // itemsize)
    sub = 8 * packing
    return (-(-rows // sub)) * (-(-cols // 128)) * 4096


def _choose_tb(B, bytes_per_example, *, lane_padded):
    # Move ~1-2 MB of input per grid step (amortises the ~0.35 us/step fixed
    # cost, i.e. the measured 85%+-of-roofline regime), but keep the grid at
    # >=2 (ideally >=4) steps when the batch allows so v7x's two TensorCores
    # both get a share of the "parallel" axis and the DMA pipeline overlaps.
    # The row-major path lane-pads its (tb, C) VMEM blocks to 128 lanes, so it
    # uses a smaller byte target to stay comfortably inside VMEM.
    target = (1 << 20) if lane_padded else (2 << 20)
    tb = max(256, target // max(1, bytes_per_example))
    if B >= 1024:
        tb = min(tb, -(-B // 4))
    elif B >= 512:
        tb = min(tb, -(-B // 2))
    tb = min(tb, _MAX_TB)
    if tb >= B:
        return B  # single block: block dims == full dims (always legal)
    return min(B, max(128, _round_up(tb, 128)))


def _atloss_kernel(logits_ref, labels_ref, out_ref, *, transpose_in):
    # Math layout is lane-dense: classes on sublanes, examples on lanes.
    logits = logits_ref[...].astype(jnp.float32)
    labels = labels_ref[...].astype(jnp.float32)
    if transpose_in:
        # Native (tb, C) row block -> (C, tb).  One XLU transpose per block
        # instead of a separate XLA transpose pass over the whole array in HBM.
        logits = jnp.transpose(logits)
        labels = jnp.transpose(labels)

    C, TB = logits.shape
    neg_big = jnp.float32(-1e30)

    row = jax.lax.broadcasted_iota(jnp.int32, (C, TB), dimension=0)
    is_c0 = row == 0  # threshold class (class 0)

    # Reference zeroes labels[:, 0]; do it once and reuse it for the positive
    # mask and both weighted sums.  (Binary {0,1} labels assumed.)
    labels = jnp.where(is_c0, 0.0, labels)
    pos = labels > 0.0
    mask1 = pos | is_c0

    # Branch 1: log-softmax over {positives U class 0}, weighted by labels:
    #   loss1 = n_pos * (m1 + log s1) - sum(labels * logits)
    masked1 = jnp.where(mask1, logits, neg_big)
    m1 = jnp.max(masked1, axis=0, keepdims=True)                    # (1, TB)
    s1 = jnp.sum(jnp.exp(masked1 - m1), axis=0, keepdims=True)      # (1, TB)
    n_pos = jnp.sum(labels, axis=0, keepdims=True)
    pos_dot = jnp.sum(labels * logits, axis=0, keepdims=True)
    loss1 = (m1 + jnp.log(s1)) * n_pos - pos_dot

    # Branch 2: log-softmax over {negatives U class 0}, one-hot weight at 0:
    #   loss2 = (m2 + log s2) - logits[0]
    masked2 = jnp.where(pos, neg_big, logits)
    m2 = jnp.max(masked2, axis=0, keepdims=True)
    s2 = jnp.sum(jnp.exp(masked2 - m2), axis=0, keepdims=True)
    loss2 = m2 + jnp.log(s2) - logits[0:1, :]

    out_ref[...] = loss1 + loss2  # lane-dense (1, TB) per-example losses


@functools.partial(jax.jit, static_argnames=("tb", "class_major"))
def _per_example_loss_mean(logits, labels, *, tb, class_major):
    if class_major:
        C, B = logits.shape
        in_block = (C, tb)
        in_map = lambda i: (0, i)
    else:
        B, C = logits.shape
        in_block = (tb, C)
        in_map = lambda i: (i, 0)
    grid = -(-B // tb)

    # VMEM budget: double-buffered inputs + output + f32 temporaries
    # (transposed copies, masks, exp terms), all with (8,128) tile padding.
    in_buf = (_tile_vmem_bytes(in_block[0], in_block[1], logits.dtype.itemsize)
              + _tile_vmem_bytes(in_block[0], in_block[1], labels.dtype.itemsize))
    tmp_buf = (10 if not class_major else 8) * _tile_vmem_bytes(C, tb, 4)
    out_buf = 2 * _tile_vmem_bytes(1, tb, 4)
    vmem_limit = int(min(max(2 * in_buf + out_buf + tmp_buf + (4 << 20),
                             16 << 20), 48 << 20))

    per_ex = pl.pallas_call(
        functools.partial(_atloss_kernel, transpose_in=not class_major),
        out_shape=jax.ShapeDtypeStruct((1, B), jnp.float32),
        grid=(grid,),
        in_specs=[pl.BlockSpec(in_block, in_map),
                  pl.BlockSpec(in_block, in_map)],
        out_specs=pl.BlockSpec((1, tb), lambda i: (0, i)),
        compiler_params=pltpu.CompilerParams(
            dimension_semantics=("parallel",),
            vmem_limit_bytes=vmem_limit,
        ),
    )(logits, labels)
    # Final batch mean is a trivial XLA reduction over the (1, B) output.
    return per_ex[0].mean()


# Tri-state cache: None = untested, True = in-kernel transpose lowers on this
# jax/libtpu build, False = fall back to a wrapper-side transpose.
_ROWMAJOR_TRANSPOSE_OK = None


def at_loss(logits, labels, *, class_major=False, tb=None):
    """ATLoss.forward (adaptive-thresholding loss).

    class_major=False (default): logits/labels are (B, C), like the PyTorch
        module.  Blocks are read row-major straight from HBM (no wrapper
        transpose, no padding copy) and transposed in-kernel.
    class_major=True (preferred producer contract): logits/labels are already
        (C, B) — e.g. emitted that way by the upstream classifier matmul —
        which is the zero-layout-cost path.

    Labels are assumed binary {0, 1}; labels[:, 0] is ignored (zeroed), as in
    the reference.  Inputs may be bf16/f32 (math is f32 in-kernel).
    """
    global _ROWMAJOR_TRANSPOSE_OK
    assert logits.shape == labels.shape and logits.ndim == 2

    if class_major:
        C, B = logits.shape
    else:
        B, C = logits.shape
    # TODO(synk): tile the class axis too if C ever grows into the thousands.
    bytes_per_ex = C * (logits.dtype.itemsize + labels.dtype.itemsize)
    if tb is None:
        tb = _choose_tb(B, bytes_per_ex, lane_padded=not class_major)
    else:
        tb = min(int(tb), B)
        if tb < B:
            tb = max(128, _round_up(tb, 128))  # lane-dense output blocks

    if class_major:
        return _per_example_loss_mean(logits, labels, tb=tb, class_major=True)

    if _ROWMAJOR_TRANSPOSE_OK is not False:
        try:
            out = _per_example_loss_mean(logits, labels, tb=tb, class_major=False)
            _ROWMAJOR_TRANSPOSE_OK = True
            return out
        except Exception:
            if _ROWMAJOR_TRANSPOSE_OK:
                raise  # path worked before: this is a real error
            _ROWMAJOR_TRANSPOSE_OK = False
    # Safety net only (if this Mosaic build can't lower the in-kernel
    # transpose): one extra XLA transpose pass, then the class-major kernel.
    return _per_example_loss_mean(logits.T, labels.T, tb=tb, class_major=True)


def _at_loss_ref(logits, labels):
    # Pure-JAX reference mirroring the PyTorch module.
    logits = logits.astype(jnp.float32)
    labels = labels.astype(jnp.float32)
    th_label = jnp.zeros_like(labels).at[:, 0].set(1.0)
    labels = labels.at[:, 0].set(0.0)
    p_mask = labels + th_label
    n_mask = 1.0 - labels
    logit1 = logits - (1.0 - p_mask) * 1e30
    loss1 = -(jax.nn.log_softmax(logit1, axis=-1) * labels).sum(1)
    logit2 = logits - (1.0 - n_mask) * 1e30
    loss2 = -(jax.nn.log_softmax(logit2, axis=-1) * th_label).sum(1)
    return (loss1 + loss2).mean()


if __name__ == "__main__":
    key = jax.random.PRNGKey(0)
    k1, k2, k3, k4 = jax.random.split(key, 4)

    # Case 1: tiny batch, single-block path (B=8, C=16).
    B1, C1 = 8, 16
    logits1 = jax.random.normal(k1, (B1, C1), dtype=jnp.float32) * 2.0
    labels1 = (jax.random.uniform(k2, (B1, C1)) > 0.7).astype(jnp.float32)
    out1 = jax.block_until_ready(at_loss(logits1, labels1))
    ref1 = jax.block_until_ready(_at_loss_ref(logits1, labels1))
    assert jnp.allclose(out1, ref1, rtol=1e-4, atol=1e-4), (out1, ref1)

    # Case 2: multi-block grid with a ragged (unpadded) trailing block.
    B2, C2 = 260, 20
    logits2 = jax.random.normal(k3, (B2, C2), dtype=jnp.float32) * 3.0
    labels2 = (jax.random.uniform(k4, (B2, C2)) > 0.8).astype(jnp.float32)
    out2 = jax.block_until_ready(at_loss(logits2, labels2, tb=128))
    ref2 = jax.block_until_ready(_at_loss_ref(logits2, labels2))
    assert jnp.allclose(out2, ref2, rtol=1e-4, atol=1e-4), (out2, ref2)

    # Case 3: class-major producer contract (zero-copy lane-dense path).
    out3 = jax.block_until_ready(
        at_loss(logits2.T, labels2.T, class_major=True, tb=128))
    assert jnp.allclose(out3, ref2, rtol=1e-4, atol=1e-4), (out3, ref2)

    # Case 4: bf16 logits shipped narrow over HBM, upcast in-kernel.
    logits4 = logits2.astype(jnp.bfloat16)
    out4 = jax.block_until_ready(at_loss(logits4, labels2, tb=128))
    ref4 = jax.block_until_ready(_at_loss_ref(logits4.astype(jnp.float32), labels2))
    assert jnp.allclose(out4, ref4, rtol=1e-3, atol=1e-3), (out4, ref4)

    print("KERNEL_OK")
</pallas_src>

<mosaic_0001>
module attributes {stable_mosaic.version = 11 : i64} {
  func.func @_atloss_kernel(%arg0: i32, %arg1: memref<8x16xf32, #tpu.memory_space<vmem>>, %arg2: memref<8x16xf32, #tpu.memory_space<vmem>>, %arg3: memref<1x8xf32, #tpu.memory_space<vmem>>) attributes {dimension_semantics = [#tpu.dimension_semantics<parallel>], iteration_bounds = array<i64: 1>, scalar_prefetch = 0 : i64, scratch_operands = 0 : i64, tpu.core_type = #tpu.core_type<tc>, window_params = [{transform_indices = @transform_0, window_bounds = array<i64: 8, 16>}, {transform_indices = @transform_1, window_bounds = array<i64: 8, 16>}, {transform_indices = @transform_2, window_bounds = array<i64: 1, 8>}]} {
    %c0 = arith.constant 0 : index
    %c0_0 = arith.constant 0 : index
    %0 = vector.load %arg1[%c0, %c0_0] : memref<8x16xf32, #tpu.memory_space<vmem>>, vector<8x16xf32>
    %c0_1 = arith.constant 0 : index
    %c0_2 = arith.constant 0 : index
    %1 = vector.load %arg2[%c0_1, %c0_2] : memref<8x16xf32, #tpu.memory_space<vmem>>, vector<8x16xf32>
    %2 = tpu.transpose %0, [1, 0] : vector<8x16xf32> -> vector<16x8xf32>
    %3 = tpu.transpose %1, [1, 0] : vector<8x16xf32> -> vector<16x8xf32>
    %4 = tpu.iota {dimensions = array<i32: 0>} : vector<16x8xi32>
    %c0_i32 = arith.constant 0 : i32
    %5 = vector.broadcast %c0_i32 : i32 to vector<16x8xi32>
    %6 = arith.cmpi eq, %4, %5 : vector<16x8xi32>
    %cst = arith.constant 0.000000e+00 : f32
    %7 = vector.broadcast %cst : f32 to vector<16x8xf32>
    %8 = arith.select %6, %7, %3 : vector<16x8xi1>, vector<16x8xf32>
    %cst_3 = arith.constant 0.000000e+00 : f32
    %9 = vector.broadcast %cst_3 : f32 to vector<16x8xf32>
    %10 = arith.cmpf ogt, %8, %9 : vector<16x8xf32>
    %11 = arith.ori %10, %6 : vector<16x8xi1>
    %cst_4 = arith.constant -1.000000e+30 : f32
    %12 = vector.broadcast %cst_4 : f32 to vector<16x8xf32>
    %13 = arith.select %11, %2, %12 : vector<16x8xi1>, vector<16x8xf32>
    %cst_5 = arith.constant dense<0xFF800000> : vector<8xf32>
    %14 = vector.multi_reduction <maximumf>, %13, %cst_5 [0] : vector<16x8xf32> to vector<8xf32>
    %15 = vector.shape_cast %14 : vector<8xf32> to vector<1x8xf32>
    %16 = vector.broadcast %15 : vector<1x8xf32> to vector<16x8xf32>
    %17 = arith.subf %13, %16 : vector<16x8xf32>
    %18 = math.exp %17 : vector<16x8xf32>
    %cst_6 = arith.constant dense<0.000000e+00> : vector<8xf32>
    %19 = vector.multi_reduction <add>, %18, %cst_6 [0] : vector<16x8xf32> to vector<8xf32>
    %20 = vector.shape_cast %19 : vector<8xf32> to vector<1x8xf32>
    %cst_7 = arith.constant dense<0.000000e+00> : vector<8xf32>
    %21 = vector.multi_reduction <add>, %8, %cst_7 [0] : vector<16x8xf32> to vector<8xf32>
    %22 = vector.shape_cast %21 : vector<8xf32> to vector<1x8xf32>
    %23 = arith.mulf %8, %2 : vector<16x8xf32>
    %cst_8 = arith.constant dense<0.000000e+00> : vector<8xf32>
    %24 = vector.multi_reduction <add>, %23, %cst_8 [0] : vector<16x8xf32> to vector<8xf32>
    %25 = vector.shape_cast %24 : vector<8xf32> to vector<1x8xf32>
    %26 = math.log %20 : vector<1x8xf32>
    %27 = arith.addf %15, %26 : vector<1x8xf32>
    %28 = arith.mulf %27, %22 : vector<1x8xf32>
    %29 = arith.subf %28, %25 : vector<1x8xf32>
    %cst_9 = arith.constant -1.000000e+30 : f32
    %30 = vector.broadcast %cst_9 : f32 to vector<16x8xf32>
    %31 = arith.select %10, %30, %2 : vector<16x8xi1>, vector<16x8xf32>
    %cst_10 = arith.constant dense<0xFF800000> : vector<8xf32>
    %32 = vector.multi_reduction <maximumf>, %31, %cst_10 [0] : vector<16x8xf32> to vector<8xf32>
    %33 = vector.shape_cast %32 : vector<8xf32> to vector<1x8xf32>
    %34 = vector.broadcast %33 : vector<1x8xf32> to vector<16x8xf32>
    %35 = arith.subf %31, %34 : vector<16x8xf32>
    %36 = math.exp %35 : vector<16x8xf32>
    %cst_11 = arith.constant dense<0.000000e+00> : vector<8xf32>
    %37 = vector.multi_reduction <add>, %36, %cst_11 [0] : vector<16x8xf32> to vector<8xf32>
    %38 = vector.shape_cast %37 : vector<8xf32> to vector<1x8xf32>
    %39 = math.log %38 : vector<1x8xf32>
    %40 = arith.addf %33, %39 : vector<1x8xf32>
    %41 = vector.extract_strided_slice %2 {offsets = [0, 0], sizes = [1, 8], strides = [1, 1]} : vector<16x8xf32> to vector<1x8xf32>
    %42 = arith.subf %40, %41 : vector<1x8xf32>
    %43 = arith.addf %29, %42 : vector<1x8xf32>
    %c0_12 = arith.constant 0 : index
    %c0_13 = arith.constant 0 : index
    %44 = vector.load %arg3[%c0_12, %c0_13] : memref<1x8xf32, #tpu.memory_space<vmem>>, vector<1x8xf32>
    tpu.vector_store %arg3[%c0_12, %c0_13], %43 {strides = array<i32>} : memref<1x8xf32, #tpu.memory_space<vmem>>, vector<1x8xf32>,
    return
  }
  func.func @transform_0(%arg0: i32) -> (i32, i32) {
    %c0_i32 = arith.constant 0 : i32
    %c0_i32_0 = arith.constant 0 : i32
    return %arg0, %c0_i32 : i32, i32
  }
  func.func @transform_1(%arg0: i32) -> (i32, i32) {
    %c0_i32 = arith.constant 0 : i32
    %c0_i32_0 = arith.constant 0 : i32
    return %arg0, %c0_i32 : i32, i32
  }
  func.func @transform_2(%arg0: i32) -> (i32, i32) {
    %c0_i32 = arith.constant 0 : i32
    %c0_i32_0 = arith.constant 0 : i32
    return %c0_i32, %arg0 : i32, i32
  }
}

module attributes {stable_mosaic.version = 11 : i64} {
  func.func @_atloss_kernel(%arg0: i32, %arg1: memref<16x8xf32, #tpu.memory_space<vmem>>, %arg2: memref<16x8xf32, #tpu.memory_space<vmem>>, %arg3: memref<1x8xf32, #tpu.memory_space<vmem>>) attributes {dimension_semantics = [#tpu.dimension_semantics<parallel>], iteration_bounds = array<i64: 1>, scalar_prefetch = 0 : i64, scratch_operands = 0 : i64, tpu.core_type = #tpu.core_type<tc>, window_params = [{transform_indices = @transform_0, window_bounds = array<i64: 16, 8>}, {transform_indices = @transform_1, window_bounds = array<i64: 16, 8>}, {transform_indices = @transform_2, window_bounds = array<i64: 1, 8>}]} {
    %c0 = arith.constant 0 : index
    %c0_0 = arith.constant 0 : index
    %0 = vector.load %arg1[%c0, %c0_0] : memref<16x8xf32, #tpu.memory_space<vmem>>, vector<16x8xf32>
    %c0_1 = arith.constant 0 : index
    %c0_2 = arith.constant 0 : index
    %1 = vector.load %arg2[%c0_1, %c0_2] : memref<16x8xf32, #tpu.memory_space<vmem>>, vector<16x8xf32>
    %2 = tpu.iota {dimensions = array<i32: 0>} : vector<16x8xi32>
    %c0_i32 = arith.constant 0 : i32
    %3 = vector.broadcast %c0_i32 : i32 to vector<16x8xi32>
    %4 = arith.cmpi eq, %2, %3 : vector<16x8xi32>
    %cst = arith.constant 0.000000e+00 : f32
    %5 = vector.broadcast %cst : f32 to vector<16x8xf32>
    %6 = arith.select %4, %5, %1 : vector<16x8xi1>, vector<16x8xf32>
    %cst_3 = arith.constant 0.000000e+00 : f32
    %7 = vector.broadcast %cst_3 : f32 to vector<16x8xf32>
    %8 = arith.cmpf ogt, %6, %7 : vector<16x8xf32>
    %9 = arith.ori %8, %4 : vector<16x8xi1>
    %cst_4 = arith.constant -1.000000e+30 : f32
    %10 = vector.broadcast %cst_4 : f32 to vector<16x8xf32>
    %11 = arith.select %9, %0, %10 : vector<16x8xi1>, vector<16x8xf32>
    %cst_5 = arith.constant dense<0xFF800000> : vector<8xf32>
    %12 = vector.multi_reduction <maximumf>, %11, %cst_5 [0] : vector<16x8xf32> to vector<8xf32>
    %13 = vector.shape_cast %12 : vector<8xf32> to vector<1x8xf32>
    %14 = vector.broadcast %13 : vector<1x8xf32> to vector<16x8xf32>
    %15 = arith.subf %11, %14 : vector<16x8xf32>
    %16 = math.exp %15 : vector<16x8xf32>
    %cst_6 = arith.constant dense<0.000000e+00> : vector<8xf32>
    %17 = vector.multi_reduction <add>, %16, %cst_6 [0] : vector<16x8xf32> to vector<8xf32>
    %18 = vector.shape_cast %17 : vector<8xf32> to vector<1x8xf32>
    %cst_7 = arith.constant dense<0.000000e+00> : vector<8xf32>
    %19 = vector.multi_reduction <add>, %6, %cst_7 [0] : vector<16x8xf32> to vector<8xf32>
    %20 = vector.shape_cast %19 : vector<8xf32> to vector<1x8xf32>
    %21 = arith.mulf %6, %0 : vector<16x8xf32>
    %cst_8 = arith.constant dense<0.000000e+00> : vector<8xf32>
    %22 = vector.multi_reduction <add>, %21, %cst_8 [0] : vector<16x8xf32> to vector<8xf32>
    %23 = vector.shape_cast %22 : vector<8xf32> to vector<1x8xf32>
    %24 = math.log %18 : vector<1x8xf32>
    %25 = arith.addf %13, %24 : vector<1x8xf32>
    %26 = arith.mulf %25, %20 : vector<1x8xf32>
    %27 = arith.subf %26, %23 : vector<1x8xf32>
    %cst_9 = arith.constant -1.000000e+30 : f32
    %28 = vector.broadcast %cst_9 : f32 to vector<16x8xf32>
    %29 = arith.select %8, %28, %0 : vector<16x8xi1>, vector<16x8xf32>
    %cst_10 = arith.constant dense<0xFF800000> : vector<8xf32>
    %30 = vector.multi_reduction <maximumf>, %29, %cst_10 [0] : vector<16x8xf32> to vector<8xf32>
    %31 = vector.shape_cast %30 : vector<8xf32> to vector<1x8xf32>
    %32 = vector.broadcast %31 : vector<1x8xf32> to vector<16x8xf32>
    %33 = arith.subf %29, %32 : vector<16x8xf32>
    %34 = math.exp %33 : vector<16x8xf32>
    %cst_11 = arith.constant dense<0.000000e+00> : vector<8xf32>
    %35 = vector.multi_reduction <add>, %34, %cst_11 [0] : vector<16x8xf32> to vector<8xf32>
    %36 = vector.shape_cast %35 : vector<8xf32> to vector<1x8xf32>
    %37 = math.log %36 : vector<1x8xf32>
    %38 = arith.addf %31, %37 : vector<1x8xf32>
    %39 = vector.extract_strided_slice %0 {offsets = [0, 0], sizes = [1, 8], strides = [1, 1]} : vector<16x8xf32> to vector<1x8xf32>
    %40 = arith.subf %38, %39 : vector<1x8xf32>
    %41 = arith.addf %27, %40 : vector<1x8xf32>
    %c0_12 = arith.constant 0 : index
    %c0_13 = arith.constant 0 : index
    %42 = vector.load %arg3[%c0_12, %c0_13] : memref<1x8xf32, #tpu.memory_space<vmem>>, vector<1x8xf32>
    tpu.vector_store %arg3[%c0_12, %c0_13], %41 {strides = array<i32>} : memref<1x8xf32, #tpu.memory_space<vmem>>, vector<1x8xf32>,
    return
  }
  func.func @transform_0(%arg0: i32) -> (i32, i32) {
    %c0_i32 = arith.constant 0 : i32
    %c0_i32_0 = arith.constant 0 : i32
    return %c0_i32, %arg0 : i32, i32
  }
  func.func @transform_1(%arg0: i32) -> (i32, i32) {
    %c0_i32 = arith.constant 0 : i32
    %c0_i32_0 = arith.constant 0 : i32
    return %c0_i32, %arg0 : i32, i32
  }
  func.func @transform_2(%arg0: i32) -> (i32, i32) {
    %c0_i32 = arith.constant 0 : i32
    %c0_i32_0 = arith.constant 0 : i32
    return %c0_i32, %arg0 : i32, i32
  }
}

</mosaic_0001>

<bundles_post_ra>
// kernel: _per_example_loss_mean.1
= control target key start
LH: loop header
LB: loop body
LE: loop exit
PB: predicated region body
PF: predicated region fallthrough
CT: control target
= control target key end

     0   :  { %7 = vsyncpa [#allocation3], 0  ;;  %s333_s0 = inlined_call_operand.hbm [shape: f32[8,16], index: 0, kind: input, shape index: {}]   ;;  %s334_s1 = inlined_call_operand.hbm [shape: f32[8,16], index: 1, kind: input, shape index: {}]   ;;  %s335_s2 = inlined_call_operand.vmem [shape: f32[1,8], index: 2, kind: output, shape index: {}]  }
   0x1   :  { %8 = vsyncpa [#allocation5], 0  ;;  %s266_s9 = smov [#allocation2]   ;;  %s267_s11 = smov [#allocation4]  }
   0x2   :  { %s15_s10 = sshll.u32 %s266_s9, 4  ;;  %s25_s12 = sshll.u32 %s267_s11, 4  ;;  %s16_s10 = int_to_ptr.vmem [resolvable:$true] %s15_s10  ;;  %s26_s12 = int_to_ptr.vmem [resolvable:$true] %s25_s12 }
   0x3   :  { %s218_s15 = scalar_lea.hbm %s333_s0, 128 }
   0x4   :  { %p219_p0 = scmp.ne.s32.totalorder %s333_s0, %s218_s15  ;;  %p222_p1 = scmp.lt.u32.totalorder %s218_s15, %s333_s0 }
   0x6   :  { %p224_p2 = pnand %p222_p1, %p219_p0 }
   0x8   :  { %227 = shalt.err (!%p224_p2)
}
   0x9   :  { %s228_s20 = scalar_lea.vmem %s16_s10, 128  ;;  %p233_p4 = scmp.lt.s32.totalorder %s16_s10, %s16_s10 }
   0xa   :  { %p229_p3 = scmp.ne.s32.totalorder %s16_s10, %s228_s20  ;;  %p234_p5 = scmp.lt.s32.totalorder %s228_s20, %s228_s20 }
   0xc   :  { %p235_p6 = por %p234_p5, %p233_p4 }
   0xe   :  { %p236_p7 = pnand %p235_p6, %p229_p3 }
  0x10   :  { %239 = shalt.err (!%p236_p7)
}
  0x11   :  { %18 = dma.hbm_to_vmem [thread:$0]  %s333_s0, 128, %s16_s10, [#allocation3]  }
  0x12   :  { %s240_s25 = scalar_lea.hbm %s334_s1, 128 }
  0x13   :  { %p241_p8 = scmp.ne.s32.totalorder %s334_s1, %s240_s25  ;;  %p244_p9 = scmp.lt.u32.totalorder %s240_s25, %s334_s1 }
  0x15   :  { %p246_p10 = pnand %p244_p9, %p241_p8 }
  0x17   :  { %249 = shalt.err (!%p246_p10)
}
  0x18   :  { %s250_s30 = scalar_lea.vmem %s26_s12, 128  ;;  %p255_p12 = scmp.lt.s32.totalorder %s26_s12, %s26_s12 }
  0x19   :  { %p251_p11 = scmp.ne.s32.totalorder %s26_s12, %s250_s30  ;;  %p256_p13 = scmp.lt.s32.totalorder %s250_s30, %s250_s30 }
  0x1b   :  { %p257_p0 = por %p256_p13, %p255_p12 }
  0x1d   :  { %p258_p1 = pnand %p257_p0, %p251_p11 }
  0x1f   :  { %261 = shalt.err (!%p258_p1)
}
  0x20   :  { %28 = dma.hbm_to_vmem [thread:$0]  %s334_s1, 128, %s26_s12, [#allocation5]  }
  0x21   :  { %262 = dma.done.wait [#allocation3], 128  }
  0x22   :  { %263 = vsyncadd [#allocation3], 4294967168 }
  0x23   :  { %264 = dma.done.wait [#allocation5], 128  }
  0x24   :  { %265 = vsyncadd [#allocation5], 4294967168  ;;  %v36_v0 = vld [vmem:[#allocation4] sm:$0xff]  ;;  %v35_v1 = vld [vmem:[#allocation2] sm:$0xff]  ;;  %v101_v2 = vlaneseq  ;;  %vm114_vm4 = vcmask 64512   ;;  %vm195_vm5 = vcmask 57344  }
  0x25   :  { %69 = vxpose.xlu0.b32.start.end [1/1] (short) (narrow) %v36_v0, 16 }
  0x26   :  { %v102_v3 = vshrl.u32 %v101_v2, 7 }
  0x28   :  { %vm104_vm0 = vcmp.eq.s32.totalorder %v102_v3, 0 }
  0x2a   :  { %37 = vxpose.xlu0.b32.start.end [1/1] (short) (narrow) %v35_v1, 16 }
  0xa5   :  { %v85_v4 = vpop.trf.xlu0 }
  0xa6   :  { %v106_v5 = vsel %vm104_vm0, 0.0, %v85_v4 }
  0xa7   :  { %vm108_vm1 = vcmp.gt.f32.partialorder %v106_v5, 0.0  ;;  %v139_v51 = vsel %vm114_vm4, %v106_v5, 0.0 }
  0xa8   :  { %vm110_vm2 = vmor %vm108_vm1, %vm104_vm0 }
  0xa9   :  { %v86_v6 = vpop.trf.xlu0 }
  0xaa   :  { %vm109_vm3 = vcmp.gt.f32.partialorder %v86_v6, 0.0  ;;  %v140_v46 = vsel %vm114_vm4, %v86_v6, 0.0 }
  0xab   :  { %v141_v55 = vadd.f32 %v140_v46, %v139_v51 }
  0xad   :  { %v307_v7 = vpop.trf.xlu0  ;;  %v142_v62 = vrot.slane %v141_v55, 4 }
  0xae   :  { %v112_v8 = vsel %vm110_vm2, %v307_v7, -1e+30  ;;  %v164_v9 = vsel %vm108_vm1, -1e+30, %v307_v7  ;;  %v148_v47 = vmul.f32 %v106_v5, %v307_v7 }
  0xaf   :  { %v115_v13 = vsel %vm114_vm4, %v112_v8, -inf  ;;  %v166_v14 = vsel %vm114_vm4, %v164_v9, -inf  ;;  %v143_v4 = vadd.f32 %v142_v62, %v141_v55 }
  0xb0   :  { %v150_v56 = vsel %vm114_vm4, %v148_v47, 0.0 }
  0xb1   :  { %v54_v10 = vpop.trf.xlu0 }
  0xb2   :  { %v113_v11 = vsel %vm109_vm3, %v54_v10, -1e+30  ;;  %v165_v12 = vsel %vm109_vm3, -1e+30, %v54_v10  ;;  %v149_v42 = vmul.f32 %v86_v6, %v54_v10  ;;  %v144_v10 = vrot.slane %v143_v4, 2 }
  0xb3   :  { %v116_v15 = vsel %vm114_vm4, %v113_v11, -inf  ;;  %v167_v16 = vsel %vm114_vm4, %v165_v12, -inf }
  0xb4   :  { %v117_v17 = vmax.f32 %v115_v13, %v116_v15  ;;  %v168_v18 = vmax.f32 %v166_v14, %v167_v16  ;;  %v151_v53 = vsel %vm114_vm4, %v149_v42, 0.0 }
  0xb5   :  { %v152_v59 = vadd.f32 %v151_v53, %v150_v56 }
  0xb6   :  { %v118_v19 = vrot.slane %v117_v17, 4  ;;  %v169_v20 = vrot.slane %v168_v18, 4 }
  0xb7   :  { %v153_v1 = vrot.slane %v152_v59, 4 }
  0xb8   :  { %v119_v21 = vmax.f32 %v117_v17, %v118_v19  ;;  %v170_v22 = vmax.f32 %v168_v18, %v169_v20 }
  0xba   :  { %v120_v23 = vrot.slane %v119_v21, 2  ;;  %v171_v24 = vrot.slane %v170_v22, 2 }
  0xbc   :  { %v121_v25 = vmax.f32 %v119_v21, %v120_v23  ;;  %v172_v26 = vmax.f32 %v170_v22, %v171_v24 }
  0xbe   :  { %v122_v27 = vrot.slane %v121_v25, 1  ;;  %v173_v28 = vrot.slane %v172_v26, 1 }
  0xc0   :  { %v123_v29 = vmax.f32 %v121_v25, %v122_v27  ;;  %v315_v30 = vmax.f32 %v172_v26, %v173_v28 }
  0xc2   :  { %v124_v31 = vsub.f32 %v112_v8, %v123_v29  ;;  %v125_v32 = vsub.f32 %v113_v11, %v123_v29  ;;  %v175_v33 = vsub.f32 %v164_v9, %v315_v30  ;;  %v176_v34 = vsub.f32 %v165_v12, %v315_v30 }
  0xc3   :  { %v154_v8 = vadd.f32 %v153_v1, %v152_v59  ;;  %v145_v12 = vadd.f32 %v144_v10, %v143_v4 }
  0xc4   :  { %v126_v35 = vmul.f32 1.442695, %v124_v31  ;;  %v128_v36 = vmul.f32 1.442695, %v125_v32  ;;  %v177_v37 = vmul.f32 1.442695, %v175_v33 }
  0xc5   :  { %v179_v38 = vmul.f32 1.442695, %v176_v34  ;;  %v155_v11 = vrot.slane %v154_v8, 2  ;;  %v146_v14 = vrot.slane %v145_v12, 1 }
  0xc6   :  { %206 = vpow2.f32 %v126_v35 }
  0xc7   :  { %208 = vpow2.f32 %v128_v36  ;;  %v156_v13 = vadd.f32 %v155_v11, %v154_v8  ;;  %v147_v19 = vadd.f32 %v146_v14, %v145_v12 }
  0xc8   :  { %210 = vpow2.f32 %v177_v37 }
  0xc9   :  { %212 = vpow2.f32 %v179_v38  ;;  %v157_v16 = vrot.slane %v156_v13, 1 }
  0xcb   :  { %v158_v22 = vadd.f32 %v157_v16, %v156_v13 }
  0xd0   :  { %v207_v39 = vpop.eup %206 }
  0xd1   :  { %v209_v40 = vpop.eup %208  ;;  %v130_v41 = vsel %vm114_vm4, %v207_v39, 0.0 }
  0xd2   :  { %v211_v43 = vpop.eup %210  ;;  %v131_v44 = vsel %vm114_vm4, %v209_v40, 0.0 }
  0xd3   :  { %v213_v45 = vpop.eup %212  ;;  %v132_v48 = vadd.f32 %v131_v44, %v130_v41  ;;  %v181_v49 = vsel %vm114_vm4, %v211_v43, 0.0 }
  0xd4   :  { %v182_v50 = vsel %vm114_vm4, %v213_v45, 0.0 }
  0xd5   :  { %v133_v52 = vrot.slane %v132_v48, 4  ;;  %v183_v54 = vadd.f32 %v182_v50, %v181_v49 }
  0xd7   :  { %v134_v57 = vadd.f32 %v133_v52, %v132_v48  ;;  %v184_v58 = vrot.slane %v183_v54, 4 }
  0xd9   :  { %v135_v60 = vrot.slane %v134_v57, 2  ;;  %v185_v61 = vadd.f32 %v184_v58, %v183_v54 }
  0xdb   :  { %v136_v63 = vadd.f32 %v135_v60, %v134_v57  ;;  %v186_v0 = vrot.slane %v185_v61, 2 }
  0xdd   :  { %v137_v2 = vrot.slane %v136_v63, 1  ;;  %v187_v3 = vadd.f32 %v186_v0, %v185_v61 }
  0xdf   :  { %v138_v5 = vadd.f32 %v137_v2, %v136_v63  ;;  %v188_v6 = vrot.slane %v187_v3, 1 }
  0xe1   :  { %214 = vlog2.f32 %v138_v5  ;;  %v189_v9 = vadd.f32 %v188_v6, %v187_v3 }
  0xe3   :  { %216 = vlog2.f32 %v189_v9 }
  0xeb   :  { %v215_v15 = vpop.eup %214 }
  0xec   :  { %v160_v17 = vmul.f32 0.6931472, %v215_v15 }
  0xed   :  { %v217_v18 = vpop.eup %216 }
  0xee   :  { %v161_v20 = vadd.f32 %v160_v17, %v123_v29  ;;  %v191_v21 = vmul.f32 0.6931472, %v217_v18 }
  0xf0   :  { %v162_v23 = vmul.f32 %v161_v20, %v147_v19  ;;  %v192_v24 = vadd.f32 %v191_v21, %v315_v30 }
  0xf2   :  { %v163_v25 = vsub.f32 %v162_v23, %v158_v22  ;;  %v193_v26 = vsub.f32 %v192_v24, %v307_v7 }
  0xf4   :  { %v194_v27 = vadd.f32 %v193_v26, %v163_v25 }
  0xf6   :  { %196 = vst.msk [vmem:[%s335_s2] sm:$0x1] %vm195_vm5, %v194_v27 }
  0xf7   :  { %201 = vsyncpa [#allocation3], 1 }
  0xf8   :  { %202 = vsyncpa [#allocation5], 1 }

// kernel: _per_example_loss_mean.1
= control target key start
LH: loop header
LB: loop body
LE: loop exit
PB: predicated region body
PF: predicated region fallthrough
CT: control target
= control target key end

     0   :  { %v15_v0 = vlaneseq  ;;  %vm28_vm2 = vcmask 64512   ;;  %vm109_vm5 = vcmask 57344   ;;  %s180_s0 = inlined_call_operand.vmem [shape: f32[16,8], index: 0, kind: input, shape index: {}]   ;;  %s181_s1 = inlined_call_operand.vmem [shape: f32[16,8], index: 1, kind: input, shape index: {}]   ;;  %s182_s2 = inlined_call_operand.vmem [shape: f32[1,8], index: 2, kind: output, shape index: {}]  }
   0x1   :  { %v12_v1 = vld [vmem:[%s180_s0 + $0x8] sm:$0xff]  ;;  %v13_v2 = vld [vmem:[%s181_s1] sm:$0xff] }
   0x2   :  { %v14_v3 = vld [vmem:[%s181_s1 + $0x8] sm:$0xff]  ;;  %v16_v4 = vshrl.u32 %v15_v0, 7  ;;  %v154_v7 = vld [vmem:[%s180_s0] sm:$0xff] }
   0x3   :  { %vm23_vm0 = vcmp.gt.f32.partialorder %v14_v3, 0.0  ;;  %v63_v39 = vmul.f32 %v14_v3, %v12_v1  ;;  %v54_v44 = vsel %vm28_vm2, %v14_v3, 0.0 }
   0x4   :  { %vm18_vm1 = vcmp.eq.s32.totalorder %v16_v4, 0  ;;  %v27_v5 = vsel %vm23_vm0, %v12_v1, -1e+30  ;;  %v79_v6 = vsel %vm23_vm0, -1e+30, %v12_v1 }
   0x5   :  { %v20_v8 = vsel %vm18_vm1, 0.0, %v13_v2  ;;  %v81_v9 = vsel %vm28_vm2, %v79_v6, -inf  ;;  %v30_v10 = vsel %vm28_vm2, %v27_v5, -inf  ;;  %v65_v50 = vsel %vm28_vm2, %v63_v39, 0.0 }
   0x6   :  { %vm22_vm3 = vcmp.gt.f32.partialorder %v20_v8, 0.0  ;;  %v62_v38 = vmul.f32 %v20_v8, %v154_v7  ;;  %v53_v43 = vsel %vm28_vm2, %v20_v8, 0.0 }
   0x7   :  { %vm24_vm4 = vmor %vm22_vm3, %vm18_vm1  ;;  %v78_v11 = vsel %vm22_vm3, -1e+30, %v154_v7  ;;  %v55_v52 = vadd.f32 %v54_v44, %v53_v43 }
   0x8   :  { %v26_v12 = vsel %vm24_vm4, %v154_v7, -1e+30  ;;  %v80_v13 = vsel %vm28_vm2, %v78_v11, -inf  ;;  %v64_v49 = vsel %vm28_vm2, %v62_v38, 0.0 }
   0x9   :  { %v29_v14 = vsel %vm28_vm2, %v26_v12, -inf  ;;  %v82_v15 = vmax.f32 %v80_v13, %v81_v9  ;;  %v66_v55 = vadd.f32 %v65_v50, %v64_v49  ;;  %v56_v58 = vrot.slane %v55_v52, 4 }
   0xa   :  { %v31_v16 = vmax.f32 %v29_v14, %v30_v10 }
   0xb   :  { %v83_v17 = vrot.slane %v82_v15, 4  ;;  %v67_v61 = vrot.slane %v66_v55, 4  ;;  %v57_v0 = vadd.f32 %v56_v58, %v55_v52 }
   0xc   :  { %v32_v18 = vrot.slane %v31_v16, 4 }
   0xd   :  { %v84_v19 = vmax.f32 %v82_v15, %v83_v17  ;;  %v68_v3 = vadd.f32 %v67_v61, %v66_v55 }
   0xe   :  { %v33_v20 = vmax.f32 %v31_v16, %v32_v18 }
   0xf   :  { %v85_v21 = vrot.slane %v84_v19, 2  ;;  %v69_v9 = vrot.slane %v68_v3, 2 }
  0x10   :  { %v34_v22 = vrot.slane %v33_v20, 2 }
  0x11   :  { %v86_v23 = vmax.f32 %v84_v19, %v85_v21 }
  0x12   :  { %v35_v24 = vmax.f32 %v33_v20, %v34_v22 }
  0x13   :  { %v87_v25 = vrot.slane %v86_v23, 1 }
  0x14   :  { %v36_v26 = vrot.slane %v35_v24, 1 }
  0x15   :  { %v162_v27 = vmax.f32 %v86_v23, %v87_v25 }
  0x16   :  { %v37_v28 = vmax.f32 %v35_v24, %v36_v26 }
  0x17   :  { %v89_v29 = vsub.f32 %v78_v11, %v162_v27  ;;  %v90_v30 = vsub.f32 %v79_v6, %v162_v27  ;;  %v58_v6 = vrot.slane %v57_v0, 2  ;;  %v70_v11 = vadd.f32 %v69_v9, %v68_v3 }
  0x18   :  { %v38_v31 = vsub.f32 %v26_v12, %v37_v28  ;;  %v39_v32 = vsub.f32 %v27_v5, %v37_v28 }
  0x19   :  { %v91_v33 = vmul.f32 1.442695, %v89_v29  ;;  %v93_v36 = vmul.f32 1.442695, %v90_v30  ;;  %v59_v10 = vadd.f32 %v58_v6, %v57_v0  ;;  %v71_v13 = vrot.slane %v70_v11, 1 }
  0x1a   :  { %v40_v34 = vmul.f32 1.442695, %v38_v31  ;;  %v42_v35 = vmul.f32 1.442695, %v39_v32 }
  0x1b   :  { %115 = vpow2.f32 %v91_v33  ;;  %v60_v12 = vrot.slane %v59_v10, 1  ;;  %v72_v19 = vadd.f32 %v71_v13, %v70_v11 }
  0x1c   :  { %117 = vpow2.f32 %v40_v34 }
  0x1d   :  { %119 = vpow2.f32 %v42_v35  ;;  %v61_v16 = vadd.f32 %v60_v12, %v59_v10 }
  0x1e   :  { %121 = vpow2.f32 %v93_v36 }
  0x25   :  { %v116_v37 = vpop.eup %115 }
  0x26   :  { %v118_v40 = vpop.eup %117  ;;  %v95_v45 = vsel %vm28_vm2, %v116_v37, 0.0 }
  0x27   :  { %v120_v41 = vpop.eup %119  ;;  %v44_v42 = vsel %vm28_vm2, %v118_v40, 0.0 }
  0x28   :  { %v122_v46 = vpop.eup %121  ;;  %v45_v47 = vsel %vm28_vm2, %v120_v41, 0.0 }
  0x29   :  { %v46_v48 = vadd.f32 %v45_v47, %v44_v42  ;;  %v96_v51 = vsel %vm28_vm2, %v122_v46, 0.0 }
  0x2a   :  { %v97_v53 = vadd.f32 %v96_v51, %v95_v45 }
  0x2b   :  { %v47_v54 = vrot.slane %v46_v48, 4 }
  0x2c   :  { %v98_v56 = vrot.slane %v97_v53, 4 }
  0x2d   :  { %v48_v57 = vadd.f32 %v47_v54, %v46_v48 }
  0x2e   :  { %v99_v59 = vadd.f32 %v98_v56, %v97_v53 }
  0x2f   :  { %v49_v60 = vrot.slane %v48_v57, 2 }
  0x30   :  { %v100_v62 = vrot.slane %v99_v59, 2 }
  0x31   :  { %v50_v63 = vadd.f32 %v49_v60, %v48_v57 }
  0x32   :  { %v101_v1 = vadd.f32 %v100_v62, %v99_v59 }
  0x33   :  { %v51_v2 = vrot.slane %v50_v63, 1 }
  0x34   :  { %v102_v4 = vrot.slane %v101_v1, 1 }
  0x35   :  { %v52_v5 = vadd.f32 %v51_v2, %v50_v63 }
  0x36   :  { %v103_v8 = vadd.f32 %v102_v4, %v101_v1 }
  0x37   :  { %123 = vlog2.f32 %v52_v5 }
  0x38   :  { %125 = vlog2.f32 %v103_v8 }
  0x41   :  { %v124_v14 = vpop.eup %123 }
  0x42   :  { %v126_v15 = vpop.eup %125  ;;  %v74_v17 = vmul.f32 0.6931472, %v124_v14 }
  0x43   :  { %v105_v18 = vmul.f32 0.6931472, %v126_v15 }
  0x44   :  { %v75_v20 = vadd.f32 %v74_v17, %v37_v28 }
  0x45   :  { %v106_v21 = vadd.f32 %v105_v18, %v162_v27 }
  0x46   :  { %v76_v22 = vmul.f32 %v75_v20, %v61_v16 }
  0x47   :  { %v107_v23 = vsub.f32 %v106_v21, %v154_v7 }
  0x48   :  { %v77_v24 = vsub.f32 %v76_v22, %v72_v19 }
  0x4a   :  { %v108_v25 = vadd.f32 %v107_v23, %v77_v24 }
  0x4c   :  { %110 = vst.msk [vmem:[%s182_s2] sm:$0x1] %vm109_vm5, %v108_v25 }

</bundles_post_ra>
